<compile_context>
chip_gen: v5e
topology: v5e:2x2
jax: 0.10.0
libtpu: 0.0.40
codegen_flags: <defaults>
</compile_context>

<pallas_src>
import math
import functools
from collections import OrderedDict

import jax
import jax.numpy as jnp
from jax.experimental import pallas as pl
from jax.experimental.pallas import tpu as pltpu

NUM_LABELS_N_MASKS = 4   # module-level constant in the original file (value not given)
_LANE = 128


# --------------------------- generation-aware budgets ---------------------------

def _vmem_budget():
    cap = None
    try:
        info = pltpu.get_tpu_info()
        cap = getattr(info, "vmem_capacity_bytes", None)
    except Exception:
        cap = None
    if not cap:
        cap = 64 * 1024 * 1024          # assume smallest (v7x per-core) if unknown
    # leave headroom for compiler-internal scratch
    return int(min(cap * 3 // 4, 112 * 1024 * 1024))


_VMEM_LIMIT = _vmem_budget()
_BIG_VMEM = _VMEM_LIMIT >= 72 * 1024 * 1024     # v5e/v6e (128 MiB) vs v7x (64 MiB)

_ROW_TILES = ((1024, 512, 256, 128, 64, 32, 16, 8) if _BIG_VMEM
              else (512, 256, 128, 64, 32, 16, 8))
_KV_TILES = (1024, 512, 256, 128) if _BIG_VMEM else (512, 256, 128)
_VOCAB_TILES = ((4096, 2048, 1024, 512, 256, 128) if _BIG_VMEM
                else (2048, 1024, 512, 256, 128))
_FF_TILES = (2048, 1024, 512, 256)


# ----------------------------- in-kernel helpers -----------------------------

def _gelu(x):
    # exact erf-based gelu, same as the PyTorch reference
    return x * 0.5 * (1.0 + jax.lax.erf(x / math.sqrt(2.0)))


def _layer_norm(x, g, b, eps):
    mu = jnp.mean(x, axis=-1, keepdims=True)
    var = jnp.mean(jnp.square(x - mu), axis=-1, keepdims=True)
    return (x - mu) * jax.lax.rsqrt(var + eps) * g + b


def _ce_rows(logits, labels, c_real):
    """Per-row CrossEntropy(ignore_index=-1) on a (rows, C_pad) block; classes
    >= c_real are lane padding and excluded.  Returns (rows, 1) losses."""
    cls_iota = jax.lax.broadcasted_iota(jnp.int32, logits.shape, 1)
    masked = jnp.where(cls_iota < c_real, logits, -1e30)
    m = jnp.max(masked, axis=-1, keepdims=True)
    lse = m + jnp.log(jnp.sum(jnp.exp(masked - m), axis=-1, keepdims=True))
    picked = jnp.sum(jnp.where(cls_iota == labels, logits, 0.0),
                     axis=-1, keepdims=True)
    valid = (labels != -1).astype(jnp.float32)
    return (lse - picked) * valid


# ------------------------------ tiling helpers --------------------------------

def _pick_tile(n, candidates, min_tiles=1):
    """Largest candidate tile dividing n (with at least `min_tiles` tiles),
    else the full dimension."""
    for c in candidates:
        if n % c == 0 and n // c >= min_tiles:
            return c
    return n


@functools.lru_cache(maxsize=None)
def _single_buffer_ok():
    """Probe whether pipeline_mode=pl.Buffered(1) works on this runtime.
    Constant-index weight blocks gain nothing from double-buffering, so if
    supported we single-buffer them to halve their VMEM footprint."""
    if not hasattr(pl, "Buffered"):
        return False
    try:
        def _k(c_ref, o_ref):
            o_ref[...] = c_ref[...] + 1.0
        spec = pl.BlockSpec((8, 128), lambda i: (0, 0), pipeline_mode=pl.Buffered(1))
        out = pl.pallas_call(
            _k,
            out_shape=jax.ShapeDtypeStruct((16, 128), jnp.float32),
            grid=(2,),
            in_specs=[spec],
            out_specs=pl.BlockSpec((8, 128), lambda i: (i, 0)),
        )(jnp.zeros((8, 128), jnp.float32))
        jax.block_until_ready(out)
        return bool(jnp.all(out == 1.0))
    except Exception:
        return False


def _const_specs(arrays, grid_rank):
    """Whole-array BlockSpecs (block index 0 everywhere) for weight tensors,
    single-buffered when supported."""
    use_sb = _single_buffer_ok()
    specs = []
    for a in arrays:
        nd = a.ndim
        if grid_rank == 2:
            idx = lambda i, j, _n=nd: (0,) * _n
        else:
            idx = lambda i, j, k, _n=nd: (0,) * _n
        if use_sb:
            specs.append(pl.BlockSpec(a.shape, idx, pipeline_mode=pl.Buffered(1)))
        else:
            specs.append(pl.BlockSpec(a.shape, idx))
    return specs


# --------------------------- encoder: QKV projection ---------------------------
# TODO(synk): the real backbone is a pretrained multi-layer multi-head mBART
# encoder; here we substitute one synthetic single-head encoder layer.

def _qkv_kernel(x_ref, eg_ref, eb_ref, wqkv_ref, bqkv_ref,
                xn_ref, q_ref, kt_ref, v_ref):
    d = x_ref.shape[-1]
    x = x_ref[0]                                       # (TS, D) f32
    xn = _layer_norm(x, eg_ref[...], eb_ref[...], 1e-5)
    xn_ref[0] = xn.astype(jnp.bfloat16)
    xb = xn.astype(jnp.bfloat16)
    # fused (D, 3D) projection: one weight push / one DMA stream
    qkv = jnp.dot(xb, wqkv_ref[...], preferred_element_type=jnp.float32) + bqkv_ref[...]
    q_ref[0] = qkv[:, :d].astype(jnp.bfloat16)
    kt_ref[0] = qkv[:, d:2 * d].astype(jnp.bfloat16).T     # K pre-transposed (D, TS)
    v_ref[0] = qkv[:, 2 * d:].astype(jnp.bfloat16)


def _encoder_qkv(p, x):
    B, S, D = x.shape
    ts = _pick_tile(S, _ROW_TILES)
    w_args = [p['emb_ln_g'], p['emb_ln_b'], p['wqkv'], p['bqkv']]
    row_spec = pl.BlockSpec((1, ts, D), lambda b, s: (b, s, 0))
    kt_spec = pl.BlockSpec((1, D, ts), lambda b, s: (b, 0, s))
    in_specs = [row_spec] + _const_specs(w_args, 2)
    out_shape = (jax.ShapeDtypeStruct((B, S, D), jnp.bfloat16),   # xn (post-LN)
                 jax.ShapeDtypeStruct((B, S, D), jnp.bfloat16),   # q
                 jax.ShapeDtypeStruct((B, D, S), jnp.bfloat16),   # k^T
                 jax.ShapeDtypeStruct((B, S, D), jnp.bfloat16))   # v
    out_specs = (row_spec, row_spec, kt_spec, row_spec)
    return pl.pallas_call(
        _qkv_kernel,
        out_shape=out_shape,
        grid=(B, S // ts),
        in_specs=in_specs,
        out_specs=out_specs,
        compiler_params=pltpu.CompilerParams(
            dimension_semantics=("parallel", "parallel"),
            vmem_limit_bytes=_VMEM_LIMIT),
    )(x, *w_args)


# --------------------- encoder: flash attention + out-proj ---------------------

def _attn_kernel(xn_ref, q_ref, kt_ref, v_ref, neg_ref,
                 wo_ref, bo_ref, ln1g_ref, ln1b_ref,
                 o_ref, m_sc, l_sc, acc_sc):
    kv = pl.program_id(2)

    @pl.when(kv == 0)
    def _init():
        m_sc[...] = jnp.full(m_sc.shape, -jnp.inf, m_sc.dtype)
        l_sc[...] = jnp.zeros(l_sc.shape, l_sc.dtype)
        acc_sc[...] = jnp.zeros(acc_sc.shape, acc_sc.dtype)

    q = q_ref[0]                                       # (TQ, D) bf16
    kt = kt_ref[0]                                     # (D, TK) bf16 (pre-transposed)
    d_model = q.shape[-1]
    s = jnp.dot(q, kt, preferred_element_type=jnp.float32)
    s = s * (1.0 / math.sqrt(d_model)) + neg_ref[0]    # (TQ, TK) + (1, TK)

    m_prev = m_sc[...]
    m_new = jnp.maximum(m_prev, jnp.max(s, axis=-1, keepdims=True))
    alpha = jnp.exp(m_prev - m_new)
    p = jnp.exp(s - m_new)
    l_sc[...] = alpha * l_sc[...] + jnp.sum(p, axis=-1, keepdims=True)
    acc_sc[...] = alpha * acc_sc[...] + jnp.dot(
        p.astype(jnp.bfloat16), v_ref[0], preferred_element_type=jnp.float32)
    m_sc[...] = m_new

    @pl.when(kv == pl.num_programs(2) - 1)
    def _fin():
        ctx = acc_sc[...] / l_sc[...]                  # exact reciprocal (once/q-tile)
        attn = jnp.dot(ctx.astype(jnp.bfloat16), wo_ref[...],
                       preferred_element_type=jnp.float32) + bo_ref[...]
        h = xn_ref[0].astype(jnp.float32) + attn
        o_ref[0] = _layer_norm(h, ln1g_ref[...], ln1b_ref[...], 1e-5)


def _encoder_attn(p, xn, q, kt, v, neg_mask):
    B, S, D = q.shape
    tq = _pick_tile(S, _ROW_TILES)
    tk = _pick_tile(S, _KV_TILES)
    w_args = [p['wo'], p['bo'], p['ln1_g'], p['ln1_b']]
    q_spec = pl.BlockSpec((1, tq, D), lambda b, i, kk: (b, i, 0))
    kt_spec = pl.BlockSpec((1, D, tk), lambda b, i, kk: (b, 0, kk))
    v_spec = pl.BlockSpec((1, tk, D), lambda b, i, kk: (b, kk, 0))
    neg_spec = pl.BlockSpec((1, 1, tk), lambda b, i, kk: (b, 0, kk))
    in_specs = [q_spec, q_spec, kt_spec, v_spec, neg_spec] + _const_specs(w_args, 3)
    return pl.pallas_call(
        _attn_kernel,
        out_shape=jax.ShapeDtypeStruct((B, S, D), jnp.float32),
        grid=(B, S // tq, S // tk),
        in_specs=in_specs,
        out_specs=pl.BlockSpec((1, tq, D), lambda b, i, kk: (b, i, 0)),
        scratch_shapes=[pltpu.VMEM((tq, 1), jnp.float32),
                        pltpu.VMEM((tq, 1), jnp.float32),
                        pltpu.VMEM((tq, D), jnp.float32)],
        compiler_params=pltpu.CompilerParams(
            dimension_semantics=("parallel", "parallel", "arbitrary"),
            vmem_limit_bytes=_VMEM_LIMIT),
    )(xn, q, kt, v, neg_mask, *w_args)


# --------------------- encoder: FFN (separate, FF-axis tiled) -------------------

def _ffn_kernel(h_ref, w1_ref, b1_ref, w2_ref, b2_ref, ln2g_ref, ln2b_ref,
                o_ref, acc_sc):
    f = pl.program_id(1)

    @pl.when(f == 0)
    def _init():
        acc_sc[...] = jnp.zeros(acc_sc.shape, acc_sc.dtype)

    hb = h_ref[...].astype(jnp.bfloat16)
    t = _gelu(jnp.dot(hb, w1_ref[...], preferred_element_type=jnp.float32)
              + b1_ref[...])
    acc_sc[...] += jnp.dot(t.astype(jnp.bfloat16), w2_ref[...],
                           preferred_element_type=jnp.float32)

    @pl.when(f == pl.num_programs(1) - 1)
    def _fin():
        ffn = acc_sc[...] + b2_ref[...]
        o_ref[...] = _layer_norm(h_ref[...] + ffn, ln2g_ref[...], ln2b_ref[...], 1e-5)


def _encoder_ffn(p, h_rows):
    R, D = h_rows.shape
    FF = p['w1'].shape[1]
    ts = _pick_tile(R, _ROW_TILES)
    tf = _pick_tile(FF, _FF_TILES)
    w_args = [p['b2'], p['ln2_g'], p['ln2_b']]
    h_spec = pl.BlockSpec((ts, D), lambda r, f: (r, 0))
    in_specs = [h_spec,
                pl.BlockSpec((D, tf), lambda r, f: (0, f)),
                pl.BlockSpec((1, tf), lambda r, f: (0, f)),
                pl.BlockSpec((tf, D), lambda r, f: (f, 0))] + _const_specs(w_args, 2)
    return pl.pallas_call(
        _ffn_kernel,
        out_shape=jax.ShapeDtypeStruct((R, D), jnp.float32),
        grid=(R // ts, FF // tf),
        in_specs=in_specs,
        out_specs=h_spec,
        scratch_shapes=[pltpu.VMEM((ts, D), jnp.float32)],
        compiler_params=pltpu.CompilerParams(
            dimension_semantics=("parallel", "arbitrary"),
            vmem_limit_bytes=_VMEM_LIMIT),
    )(h_rows, p['w1'], p['b1'], p['w2'], *w_args)


# ------------- heads + fused cross-entropy (vocab-tiled LM head) ---------------

def _heads_kernel(seq_ref, lab_lm_ref, lab_nm_ref, lab_nsw_ref,
                  cls_dw_ref, cls_db_ref, cls_lng_ref, cls_lnb_ref,
                  dec_w_ref, dec_b_ref,
                  mp_w1_ref, mp_b1_ref, mp_w2_ref, mp_b2_ref,
                  nsw_w1_ref, nsw_b1_ref, nsw_w2_ref, nsw_b2_ref,
                  lm_ref, nm_ref, nsw_ref,
                  lm_loss_ref, nm_loss_ref, nsw_loss_ref,
                  h_sc, m_sc, l_sc, pick_sc):
    v = pl.program_id(1)
    tv = dec_w_ref.shape[0]

    @pl.when(v == 0)
    def _init():
        x = seq_ref[...]                               # (TS, D) f32
        xb = x.astype(jnp.bfloat16)

        # BartPhoLMHead trunk: dense -> gelu -> layernorm, cached for all vocab tiles
        h = jnp.dot(xb, cls_dw_ref[...], preferred_element_type=jnp.float32) + cls_db_ref[...]
        h = _gelu(h)
        h = _layer_norm(h, cls_lng_ref[...], cls_lnb_ref[...], 1e-12)
        h_sc[...] = h.astype(jnp.bfloat16)

        m_sc[...] = jnp.full(m_sc.shape, -jnp.inf, m_sc.dtype)
        l_sc[...] = jnp.zeros(l_sc.shape, l_sc.dtype)
        pick_sc[...] = jnp.zeros(pick_sc.shape, pick_sc.dtype)

        # BartPhoMaskNPredictionHead (output lane-padded to 128) + its fused CE
        mh = _gelu(jnp.dot(xb, mp_w1_ref[...],
                           preferred_element_type=jnp.float32) + mp_b1_ref[...])
        nm_logits = jnp.dot(mh.astype(jnp.bfloat16), mp_w2_ref[...],
                            preferred_element_type=jnp.float32) + mp_b2_ref[...]
        nm_ref[...] = nm_logits
        nm_loss_ref[...] = _ce_rows(nm_logits, lab_nm_ref[...], NUM_LABELS_N_MASKS)

        # BinaryPredictor nsw detector (lane-padded) + its fused CE
        # TODO(synk): BinaryPredictor body not given; implemented as
        # Linear(D,100) -> ReLU -> Linear(100,2).
        nh = jnp.maximum(
            jnp.dot(xb, nsw_w1_ref[...], preferred_element_type=jnp.float32)
            + nsw_b1_ref[...], 0.0)
        nsw_logits = jnp.dot(nh.astype(jnp.bfloat16), nsw_w2_ref[...],
                             preferred_element_type=jnp.float32) + nsw_b2_ref[...]
        nsw_ref[...] = nsw_logits
        nsw_loss_ref[...] = _ce_rows(nsw_logits, lab_nsw_ref[...], 2)

    # ---- tied-decoder logits for this vocab tile + online logsumexp for CE ----
    logits = jax.lax.dot_general(h_sc[...], dec_w_ref[...], (((1,), (1,)), ((), ())),
                                 preferred_element_type=jnp.float32) + dec_b_ref[...]
    lm_ref[...] = logits.astype(jnp.bfloat16)          # bf16 writeback (halves HBM)

    lab = lab_lm_ref[...]                              # (TS, 1) int32
    cls_iota = v * tv + jax.lax.broadcasted_iota(jnp.int32, logits.shape, 1)
    pick_sc[...] += jnp.sum(jnp.where(cls_iota == lab, logits, 0.0),
                            axis=-1, keepdims=True)
    m_prev = m_sc[...]
    m_new = jnp.maximum(m_prev, jnp.max(logits, axis=-1, keepdims=True))
    l_sc[...] = l_sc[...] * jnp.exp(m_prev - m_new) + jnp.sum(
        jnp.exp(logits - m_new), axis=-1, keepdims=True)
    m_sc[...] = m_new

    @pl.when(v == pl.num_programs(1) - 1)
    def _fin():
        lse = m_sc[...] + jnp.log(l_sc[...])
        valid = (lab_lm_ref[...] != -1).astype(jnp.float32)
        lm_loss_ref[...] = (lse - pick_sc[...]) * valid


def _heads(p, seq_rows, lab_lm, lab_nm, lab_nsw):
    R, D = seq_rows.shape
    V = p['emb'].shape[0]
    ts = _pick_tile(R, _ROW_TILES)        # (B,S) flattened -> big row tiles
    tv = _pick_tile(V, _VOCAB_TILES)

    act_spec = pl.BlockSpec((ts, D), lambda r, v: (r, 0))
    lab_spec = pl.BlockSpec((ts, 1), lambda r, v: (r, 0))
    cls_args = [p['cls_dw'], p['cls_db'], p['cls_lng'], p['cls_lnb']]
    head_args = [p['mp_w1'], p['mp_b1'], p['mp_w2'], p['mp_b2'],
                 p['nsw_w1'], p['nsw_b1'], p['nsw_w2'], p['nsw_b2']]

    in_specs = [act_spec, lab_spec, lab_spec, lab_spec]
    in_specs += _const_specs(cls_args, 2)
    in_specs += [pl.BlockSpec((tv, D), lambda r, v: (v, 0)),   # tied decoder (emb)
                 pl.BlockSpec((1, tv), lambda r, v: (0, v))]   # decoder bias
    in_specs += _const_specs(head_args, 2)

    out_shape = (jax.ShapeDtypeStruct((R, V), jnp.bfloat16),
                 jax.ShapeDtypeStruct((R, _LANE), jnp.float32),
                 jax.ShapeDtypeStruct((R, _LANE), jnp.float32),
                 jax.ShapeDtypeStruct((R, 1), jnp.float32),
                 jax.ShapeDtypeStruct((R, 1), jnp.float32),
                 jax.ShapeDtypeStruct((R, 1), jnp.float32))
    out_specs = (pl.BlockSpec((ts, tv), lambda r, v: (r, v)),
                 pl.BlockSpec((ts, _LANE), lambda r, v: (r, 0)),
                 pl.BlockSpec((ts, _LANE), lambda r, v: (r, 0)),
                 pl.BlockSpec((ts, 1), lambda r, v: (r, 0)),
                 pl.BlockSpec((ts, 1), lambda r, v: (r, 0)),
                 pl.BlockSpec((ts, 1), lambda r, v: (r, 0)))

    return pl.pallas_call(
        _heads_kernel,
        out_shape=out_shape,
        grid=(R // ts, V // tv),
        in_specs=in_specs,
        out_specs=out_specs,
        scratch_shapes=[pltpu.VMEM((ts, D), jnp.bfloat16),
                        pltpu.VMEM((ts, 1), jnp.float32),
                        pltpu.VMEM((ts, 1), jnp.float32),
                        pltpu.VMEM((ts, 1), jnp.float32)],
        compiler_params=pltpu.CompilerParams(
            dimension_semantics=("parallel", "arbitrary"),
            vmem_limit_bytes=_VMEM_LIMIT),
    )(seq_rows, lab_lm, lab_nm, lab_nsw, *cls_args, p['emb'], p['dec_b'], *head_args)


# ------------------------------ parameter init --------------------------------

def init_params(key, emb_rows, d_model, d_ff, max_pos, num_labels_n_masks):
    keys = jax.random.split(key, 16)
    it = iter(keys)

    def nrm(shape, dtype=jnp.bfloat16, scale=0.02):
        return (scale * jax.random.normal(next(it), shape, jnp.float32)).astype(dtype)

    def lane_pad(w, cols):
        out = jnp.zeros((w.shape[0], _LANE), jnp.float32)
        out = out.at[:, :cols].set(w.astype(jnp.float32))
        return out.astype(jnp.bfloat16)

    D = d_model
    ones = lambda s: jnp.ones(s, jnp.float32)
    zeros = lambda s: jnp.zeros(s, jnp.float32)
    return dict(
        emb=nrm((emb_rows, D)),                  # shared embedding == tied LM decoder
        pos_emb=nrm((max_pos, D), jnp.float32),
        emb_ln_g=ones((1, D)), emb_ln_b=zeros((1, D)),
        wqkv=nrm((D, 3 * D)), bqkv=zeros((1, 3 * D)),     # fused Q/K/V projection
        wo=nrm((D, D)), bo=zeros((1, D)),
        ln1_g=ones((1, D)), ln1_b=zeros((1, D)),
        w1=nrm((D, d_ff)), b1=zeros((1, d_ff)),
        w2=nrm((d_ff, D)), b2=zeros((1, D)),
        ln2_g=ones((1, D)), ln2_b=zeros((1, D)),
        cls_dw=nrm((D, D)), cls_db=zeros((1, D)),
        cls_lng=ones((1, D)), cls_lnb=zeros((1, D)),
        dec_b=zeros((1, emb_rows)),
        mp_w1=nrm((D, 50)), mp_b1=zeros((1, 50)),
        mp_w2=lane_pad(nrm((50, num_labels_n_masks), jnp.float32), num_labels_n_masks),
        mp_b2=zeros((1, _LANE)),
        nsw_w1=nrm((D, 100)), nsw_b1=zeros((1, 100)),
        nsw_w2=lane_pad(nrm((100, 2), jnp.float32), 2),
        nsw_b2=zeros((1, _LANE)),
    )


# --------------------------------- forward -----------------------------------

def _masked_mean(loss_rows, labels):
    denom = jnp.maximum(jnp.sum((labels != -1).astype(jnp.float32)), 1.0)
    return jnp.sum(loss_rows) / denom


def bartpho_forward(params, input_ids, attention_mask=None, labels=None,
                    labels_n_masks=None, standard_labels=None):
    # TODO(synk): sample_weights / soft_labels branches of the original forward
    # are not implemented.
    if attention_mask is None:
        attention_mask = jnp.ones_like(input_ids)
    B, S = input_ids.shape
    V, D = params['emb'].shape

    # glue: embedding gather + scaled embeddings + learned positions (XLA)
    x = (params['emb'][input_ids].astype(jnp.float32) * math.sqrt(D)
         + params['pos_emb'][:S][None, :, :])
    neg_mask = (1.0 - attention_mask.astype(jnp.float32))[:, None, :] * -1e9  # (B,1,S)

    xn, q, kt, v = _encoder_qkv(params, x)
    h = _encoder_attn(params, xn, q, kt, v, neg_mask)
    seq_rows = _encoder_ffn(params, h.reshape(B * S, D))     # (B,S) flattened
    sequence_output = seq_rows.reshape(B, S, D)

    def _lab(a):
        if a is None:
            a = -jnp.ones((B, S), jnp.int32)
        return a.reshape(B * S, 1).astype(jnp.int32)

    lab_lm, lab_nm, lab_nsw = _lab(labels), _lab(labels_n_masks), _lab(standard_labels)

    (lm_rows, nm_pad, nsw_pad,
     lm_loss_rows, nm_loss_rows, nsw_loss_rows) = _heads(
        params, seq_rows, lab_lm, lab_nm, lab_nsw)

    prediction_scores = lm_rows.reshape(B, S, V)
    logits_n_mask = nm_pad[:, :NUM_LABELS_N_MASKS].reshape(B, S, NUM_LABELS_N_MASKS)
    logits_nsw = nsw_pad[:, :2].reshape(B, S, 2)

    loss_dict = OrderedDict([('loss', None), ('loss_norm', 0.0),
                             ('loss_n_masks_pred', 0.0), ('loss_nsw_detection', 0.0)])
    pred_dict = OrderedDict([('logits_norm', prediction_scores),
                             ('logits_n_masks_pred', logits_n_mask),
                             ('logits_nsw_detection', logits_nsw)])

    if labels is not None:
        loss_dict['loss_n_masks_pred'] = _masked_mean(nm_loss_rows, lab_nm)
        loss_dict['loss_nsw_detection'] = _masked_mean(nsw_loss_rows, lab_nsw)
        # TODO(synk): original views prediction_scores with (vocab_size + 1)
        # labels; here the tied embedding table already has vocab_size + 1 rows.
        loss_dict['loss_norm'] = _masked_mean(lm_loss_rows, lab_lm)

    loss_dict['loss'] = (loss_dict['loss_norm'] + loss_dict['loss_n_masks_pred']
                         + loss_dict['loss_nsw_detection'])
    return loss_dict, pred_dict, sequence_output


# ----------------------------------- main -------------------------------------

if __name__ == "__main__":
    B, S, D, FF = 2, 32, 32, 64
    VOCAB_SIZE = 511
    EMB_ROWS = VOCAB_SIZE + 1          # num_labels = vocab_size + 1

    params = init_params(jax.random.PRNGKey(0), EMB_ROWS, D, FF, S, NUM_LABELS_N_MASKS)

    k1, k2, k3, k4 = jax.random.split(jax.random.PRNGKey(0), 4)
    input_ids = jax.random.randint(k1, (B, S), 0, EMB_ROWS, dtype=jnp.int32)
    attention_mask = jnp.ones((B, S), dtype=jnp.int32)
    labels = jax.random.randint(k2, (B, S), 0, EMB_ROWS, dtype=jnp.int32).at[0, 0].set(-1)
    labels_n_masks = jax.random.randint(
        k3, (B, S), 0, NUM_LABELS_N_MASKS, dtype=jnp.int32).at[1, 1].set(-1)
    standard_labels = jax.random.randint(k4, (B, S), 0, 2, dtype=jnp.int32)

    loss_dict, pred_dict, seq_out = bartpho_forward(
        params, input_ids, attention_mask, labels, labels_n_masks, standard_labels)

    jax.block_until_ready(loss_dict['loss'])
    jax.block_until_ready(pred_dict['logits_norm'])
    jax.block_until_ready(seq_out)
    print("KERNEL_OK")
</pallas_src>

<mosaic_0001>
module attributes {stable_mosaic.version = 11 : i64} {
  func.func @_k(%arg0: i32, %arg1: memref<8x128xf32, #tpu.memory_space<vmem>>, %arg2: memref<8x128xf32, #tpu.memory_space<vmem>>) attributes {dimension_semantics = [#tpu.dimension_semantics<arbitrary>], iteration_bounds = array<i64: 2>, scalar_prefetch = 0 : i64, scratch_operands = 0 : i64, tpu.core_type = #tpu.core_type<tc>, window_params = [{pipeline_mode = #tpu.pipeline_mode<synchronous>, transform_indices = @transform_0, window_bounds = array<i64: 8, 128>}, {transform_indices = @transform_1, window_bounds = array<i64: 8, 128>}]} {
    %c0 = arith.constant 0 : index
    %c0_0 = arith.constant 0 : index
    %0 = vector.load %arg1[%c0, %c0_0] : memref<8x128xf32, #tpu.memory_space<vmem>>, vector<8x128xf32>
    %cst = arith.constant 1.000000e+00 : f32
    %1 = vector.broadcast %cst : f32 to vector<8x128xf32>
    %2 = arith.addf %0, %1 : vector<8x128xf32>
    %c0_1 = arith.constant 0 : index
    %c0_2 = arith.constant 0 : index
    %3 = vector.load %arg2[%c0_1, %c0_2] : memref<8x128xf32, #tpu.memory_space<vmem>>, vector<8x128xf32>
    tpu.vector_store %arg2[%c0_1, %c0_2], %2 {strides = array<i32>} : memref<8x128xf32, #tpu.memory_space<vmem>>, vector<8x128xf32>,
    return
  }
  func.func @transform_0(%arg0: i32) -> (i32, i32) {
    %c0_i32 = arith.constant 0 : i32
    %c0_i32_0 = arith.constant 0 : i32
    %c0_i32_1 = arith.constant 0 : i32
    return %c0_i32, %c0_i32_0 : i32, i32
  }
  func.func @transform_1(%arg0: i32) -> (i32, i32) {
    %c0_i32 = arith.constant 0 : i32
    %c0_i32_0 = arith.constant 0 : i32
    return %arg0, %c0_i32 : i32, i32
  }
}

module attributes {stable_mosaic.version = 11 : i64} {
  func.func @_qkv_kernel(%arg0: i32, %arg1: i32, %arg2: memref<1x32x32xf32, #tpu.memory_space<vmem>>, %arg3: memref<1x32xf32, #tpu.memory_space<vmem>>, %arg4: memref<1x32xf32, #tpu.memory_space<vmem>>, %arg5: memref<32x96xbf16, #tpu.memory_space<vmem>>, %arg6: memref<1x96xf32, #tpu.memory_space<vmem>>, %arg7: memref<1x32x32xbf16, #tpu.memory_space<vmem>>, %arg8: memref<1x32x32xbf16, #tpu.memory_space<vmem>>, %arg9: memref<1x32x32xbf16, #tpu.memory_space<vmem>>, %arg10: memref<1x32x32xbf16, #tpu.memory_space<vmem>>) attributes {dimension_semantics = [#tpu.dimension_semantics<parallel>, #tpu.dimension_semantics<parallel>], iteration_bounds = array<i64: 2, 1>, scalar_prefetch = 0 : i64, scratch_operands = 0 : i64, tpu.core_type = #tpu.core_type<tc>, window_params = [{transform_indices = @transform_0, window_bounds = array<i64: 1, 32, 32>}, {pipeline_mode = #tpu.pipeline_mode<synchronous>, transform_indices = @transform_1, window_bounds = array<i64: 1, 32>}, {pipeline_mode = #tpu.pipeline_mode<synchronous>, transform_indices = @transform_2, window_bounds = array<i64: 1, 32>}, {pipeline_mode = #tpu.pipeline_mode<synchronous>, transform_indices = @transform_3, window_bounds = array<i64: 32, 96>}, {pipeline_mode = #tpu.pipeline_mode<synchronous>, transform_indices = @transform_4, window_bounds = array<i64: 1, 96>}, {transform_indices = @transform_5, window_bounds = array<i64: 1, 32, 32>}, {transform_indices = @transform_6, window_bounds = array<i64: 1, 32, 32>}, {transform_indices = @transform_7, window_bounds = array<i64: 1, 32, 32>}, {transform_indices = @transform_8, window_bounds = array<i64: 1, 32, 32>}]} {
    %c0 = arith.constant 0 : index
    %c0_0 = arith.constant 0 : index
    %c0_1 = arith.constant 0 : index
    %0 = vector.load %arg2[%c0, %c0_0, %c0_1] : memref<1x32x32xf32, #tpu.memory_space<vmem>>, vector<1x32x32xf32>
    %1 = vector.shape_cast %0 : vector<1x32x32xf32> to vector<32x32xf32>
    %c0_2 = arith.constant 0 : index
    %c0_3 = arith.constant 0 : index
    %2 = vector.load %arg3[%c0_2, %c0_3] : memref<1x32xf32, #tpu.memory_space<vmem>>, vector<1x32xf32>
    %c0_4 = arith.constant 0 : index
    %c0_5 = arith.constant 0 : index
    %3 = vector.load %arg4[%c0_4, %c0_5] : memref<1x32xf32, #tpu.memory_space<vmem>>, vector<1x32xf32>
    %cst = arith.constant dense<0.000000e+00> : vector<32xf32>
    %4 = vector.multi_reduction <add>, %1, %cst [1] : vector<32x32xf32> to vector<32xf32>
    %5 = vector.shape_cast %4 : vector<32xf32> to vector<32x1xf32>
    %cst_6 = arith.constant 3.200000e+01 : f32
    %6 = vector.broadcast %cst_6 : f32 to vector<32x1xf32>
    %7 = arith.divf %5, %6 : vector<32x1xf32>
    %8 = vector.broadcast %7 : vector<32x1xf32> to vector<32x32xf32>
    %9 = arith.subf %1, %8 : vector<32x32xf32>
    %10 = arith.mulf %9, %9 : vector<32x32xf32>
    %cst_7 = arith.constant dense<0.000000e+00> : vector<32xf32>
    %11 = vector.multi_reduction <add>, %10, %cst_7 [1] : vector<32x32xf32> to vector<32xf32>
    %12 = vector.shape_cast %11 : vector<32xf32> to vector<32x1xf32>
    %cst_8 = arith.constant 3.200000e+01 : f32
    %13 = vector.broadcast %cst_8 : f32 to vector<32x1xf32>
    %14 = arith.divf %12, %13 : vector<32x1xf32>
    %15 = vector.broadcast %7 : vector<32x1xf32> to vector<32x32xf32>
    %16 = arith.subf %1, %15 : vector<32x32xf32>
    %cst_9 = arith.constant 9.99999974E-6 : f32
    %17 = vector.broadcast %cst_9 : f32 to vector<32x1xf32>
    %18 = arith.addf %14, %17 : vector<32x1xf32>
    %19 = math.rsqrt %18 : vector<32x1xf32>
    %20 = vector.broadcast %19 : vector<32x1xf32> to vector<32x32xf32>
    %21 = arith.mulf %16, %20 : vector<32x32xf32>
    %22 = vector.broadcast %2 : vector<1x32xf32> to vector<32x32xf32>
    %23 = arith.mulf %21, %22 : vector<32x32xf32>
    %24 = vector.broadcast %3 : vector<1x32xf32> to vector<32x32xf32>
    %25 = arith.addf %23, %24 : vector<32x32xf32>
    %26 = arith.truncf %25 : vector<32x32xf32> to vector<32x32xbf16>
    %c0_10 = arith.constant 0 : index
    %c0_11 = arith.constant 0 : index
    %c0_12 = arith.constant 0 : index
    %27 = vector.load %arg7[%c0_10, %c0_11, %c0_12] : memref<1x32x32xbf16, #tpu.memory_space<vmem>>, vector<1x32x32xbf16>
    %28 = vector.shape_cast %27 : vector<1x32x32xbf16> to vector<32x32xbf16>
    %29 = vector.shape_cast %26 : vector<32x32xbf16> to vector<1x32x32xbf16>
    tpu.vector_store %arg7[%c0_10, %c0_11, %c0_12], %29 {strides = array<i32>} : memref<1x32x32xbf16, #tpu.memory_space<vmem>>, vector<1x32x32xbf16>,
    %30 = arith.truncf %25 : vector<32x32xf32> to vector<32x32xbf16>
    %c0_13 = arith.constant 0 : index
    %c0_14 = arith.constant 0 : index
    %31 = vector.load %arg5[%c0_13, %c0_14] : memref<32x96xbf16, #tpu.memory_space<vmem>>, vector<32x96xbf16>
    %cst_15 = arith.constant dense<0.000000e+00> : vector<32x96xf32>
    %32 = tpu.matmul %30, %31, %cst_15 {dimension_numbers = #tpu.dot_dimension_numbers<[1], [0], [0], [1], [0, 0, 1, 1], [], []>} : vector<32x32xbf16>, vector<32x96xbf16>, vector<32x96xf32> -> vector<32x96xf32>
    %c0_16 = arith.constant 0 : index
    %c0_17 = arith.constant 0 : index
    %33 = vector.load %arg6[%c0_16, %c0_17] : memref<1x96xf32, #tpu.memory_space<vmem>>, vector<1x96xf32>
    %34 = vector.broadcast %33 : vector<1x96xf32> to vector<32x96xf32>
    %35 = arith.addf %32, %34 : vector<32x96xf32>
    %36 = vector.extract_strided_slice %35 {offsets = [0, 0], sizes = [32, 32], strides = [1, 1]} : vector<32x96xf32> to vector<32x32xf32>
    %37 = arith.truncf %36 : vector<32x32xf32> to vector<32x32xbf16>
    %c0_18 = arith.constant 0 : index
    %c0_19 = arith.constant 0 : index
    %c0_20 = arith.constant 0 : index
    %38 = vector.load %arg8[%c0_18, %c0_19, %c0_20] : memref<1x32x32xbf16, #tpu.memory_space<vmem>>, vector<1x32x32xbf16>
    %39 = vector.shape_cast %38 : vector<1x32x32xbf16> to vector<32x32xbf16>
    %40 = vector.shape_cast %37 : vector<32x32xbf16> to vector<1x32x32xbf16>
    tpu.vector_store %arg8[%c0_18, %c0_19, %c0_20], %40 {strides = array<i32>} : memref<1x32x32xbf16, #tpu.memory_space<vmem>>, vector<1x32x32xbf16>,
    %41 = vector.extract_strided_slice %35 {offsets = [0, 32], sizes = [32, 32], strides = [1, 1]} : vector<32x96xf32> to vector<32x32xf32>
    %42 = arith.truncf %41 : vector<32x32xf32> to vector<32x32xbf16>
    %43 = tpu.transpose %42, [1, 0] : vector<32x32xbf16> -> vector<32x32xbf16>
    %c0_21 = arith.constant 0 : index
    %c0_22 = arith.constant 0 : index
    %c0_23 = arith.constant 0 : index
    %44 = vector.load %arg9[%c0_21, %c0_22, %c0_23] : memref<1x32x32xbf16, #tpu.memory_space<vmem>>, vector<1x32x32xbf16>
    %45 = vector.shape_cast %44 : vector<1x32x32xbf16> to vector<32x32xbf16>
    %46 = vector.shape_cast %43 : vector<32x32xbf16> to vector<1x32x32xbf16>
    tpu.vector_store %arg9[%c0_21, %c0_22, %c0_23], %46 {strides = array<i32>} : memref<1x32x32xbf16, #tpu.memory_space<vmem>>, vector<1x32x32xbf16>,
    %47 = vector.extract_strided_slice %35 {offsets = [0, 64], sizes = [32, 32], strides = [1, 1]} : vector<32x96xf32> to vector<32x32xf32>
    %48 = arith.truncf %47 : vector<32x32xf32> to vector<32x32xbf16>
    %c0_24 = arith.constant 0 : index
    %c0_25 = arith.constant 0 : index
    %c0_26 = arith.constant 0 : index
    %49 = vector.load %arg10[%c0_24, %c0_25, %c0_26] : memref<1x32x32xbf16, #tpu.memory_space<vmem>>, vector<1x32x32xbf16>
    %50 = vector.shape_cast %49 : vector<1x32x32xbf16> to vector<32x32xbf16>
    %51 = vector.shape_cast %48 : vector<32x32xbf16> to vector<1x32x32xbf16>
    tpu.vector_store %arg10[%c0_24, %c0_25, %c0_26], %51 {strides = array<i32>} : memref<1x32x32xbf16, #tpu.memory_space<vmem>>, vector<1x32x32xbf16>,
    return
  }
  func.func @transform_0(%arg0: i32, %arg1: i32) -> (i32, i32, i32) {
    %c0_i32 = arith.constant 0 : i32
    %c0_i32_0 = arith.constant 0 : i32
    return %arg0, %arg1, %c0_i32 : i32, i32, i32
  }
  func.func @transform_1(%arg0: i32, %arg1: i32) -> (i32, i32) {
    %c0_i32 = arith.constant 0 : i32
    %c0_i32_0 = arith.constant 0 : i32
    %c0_i32_1 = arith.constant 0 : i32
    return %c0_i32, %c0_i32_0 : i32, i32
  }
  func.func @transform_2(%arg0: i32, %arg1: i32) -> (i32, i32) {
    %c0_i32 = arith.constant 0 : i32
    %c0_i32_0 = arith.constant 0 : i32
    %c0_i32_1 = arith.constant 0 : i32
    return %c0_i32, %c0_i32_0 : i32, i32
  }
  func.func @transform_3(%arg0: i32, %arg1: i32) -> (i32, i32) {
    %c0_i32 = arith.constant 0 : i32
    %c0_i32_0 = arith.constant 0 : i32
    %c0_i32_1 = arith.constant 0 : i32
    return %c0_i32, %c0_i32_0 : i32, i32
  }
  func.func @transform_4(%arg0: i32, %arg1: i32) -> (i32, i32) {
    %c0_i32 = arith.constant 0 : i32
    %c0_i32_0 = arith.constant 0 : i32
    %c0_i32_1 = arith.constant 0 : i32
    return %c0_i32, %c0_i32_0 : i32, i32
  }
  func.func @transform_5(%arg0: i32, %arg1: i32) -> (i32, i32, i32) {
    %c0_i32 = arith.constant 0 : i32
    %c0_i32_0 = arith.constant 0 : i32
    return %arg0, %arg1, %c0_i32 : i32, i32, i32
  }
  func.func @transform_6(%arg0: i32, %arg1: i32) -> (i32, i32, i32) {
    %c0_i32 = arith.constant 0 : i32
    %c0_i32_0 = arith.constant 0 : i32
    return %arg0, %arg1, %c0_i32 : i32, i32, i32
  }
  func.func @transform_7(%arg0: i32, %arg1: i32) -> (i32, i32, i32) {
    %c0_i32 = arith.constant 0 : i32
    %c0_i32_0 = arith.constant 0 : i32
    return %arg0, %c0_i32, %arg1 : i32, i32, i32
  }
  func.func @transform_8(%arg0: i32, %arg1: i32) -> (i32, i32, i32) {
    %c0_i32 = arith.constant 0 : i32
    %c0_i32_0 = arith.constant 0 : i32
    return %arg0, %arg1, %c0_i32 : i32, i32, i32
  }
}

</mosaic_0001>

<bundles_post_ra>
// kernel: tpu_custom_call.1
= control target key start
LH: loop header
LB: loop body
LE: loop exit
PB: predicated region body
PF: predicated region fallthrough
CT: control target
= control target key end

     0   :  { %6 = vsyncpa [#allocation3], 0  ;;  %s441_s0 = inlined_call_operand.hbm [shape: f32[8,128], index: 0, kind: input, shape index: {}]   ;;  %s442_s1 = inlined_call_operand.hbm [shape: f32[16,128], index: 1, kind: output, shape index: {}]  }
   0x1   :  { %7 = vsyncpa [#allocation4], 0 }
   0x2   :  { %9 = vsyncpa [#allocation4 + $0x1], 0  ;;  %s357_s6 = smov 0   ;;  %s359_s7 = smov 0  }
   0x3   :  { %s361_s8 = smov 0   ;;  %s363_s9 = smov 0  }
   0x4 LB: > { %s378_s10 = sadd.s32 4294967295, %s344_s9   ;;  %s188_s11 = sadd.s32 4294967294, %s344_s9   ;;  %s344_s9 = sphi %s363_s9, %s448_s9   ;;  %s340_s8 = sphi %s361_s8, %s447_s8   ;;  %s336_s7 = sphi %s359_s7, %s446_s7   ;;  %s332_s6 = sphi %s357_s6, %s445_s6  }
   0x5   : > { %s382_s12 = sadd.s32 1, %s344_s9   ;;  %s43_s13 = sadd.s32 1, %s340_s8 }
   0x6   : > { %s40_s14 = ssub.s32 %s344_s9, %s382_s12  ;;  %p53_p0 = scmp.ne.s32.totalorder %s340_s8, %s336_s7 }
   0x7   : > { %p41_p1 = scmp.eq.s32.totalorder %s40_s14, 0  ;;  %p54_p2 = scmp.eq.s32.totalorder %s378_s10, 1 }
   0x8   : > { %p59_p3 = scmp.ne.s32.totalorder %s336_s7, %s332_s6  ;;  %p60_p4 = scmp.eq.s32.totalorder %s188_s11, 1 }
   0x9   : > { %s393_s15 = scalar_select %p41_p1, %s340_s8, %s43_s13  }
   0xa   : > { %p395_p5 = por %p54_p2, %p53_p0  ;;  %p399_p6 = por %p60_p4, %p59_p3 }
   0xb   : > { %p189_p7 = scmp.ge.s32.totalorder %s344_s9, 1  ;;  %p67_p8 = scmp.lt.s32.totalorder %s344_s9, 3 }
   0xc   : > { %p212_p9 = scmp.eq.s32.totalorder %s378_s10, 0  ;;  %s79_s20 = sshll.u32 %s441_s0, 4  ;;  %s80_s20 = int_to_ptr.hbm [resolvable:$true] %s79_s20 }
   0xd   : > { %p68_p10 = pnand %p189_p7, %p67_p8  ;;  %s346_s21 = smov [#allocation2]  }
   0xe   : > { %s81_s22 = sshll.u32 %s346_s21, 4  ;;  %s82_s22 = int_to_ptr.vmem [resolvable:$true] %s81_s22 }
   0xf   : > { %p204_p11 = pneg %p68_p10  ;;  %94 = sbr.rel (%p68_p10) target bundleno = 37 (0x25), region = 24 }
  0x11   : > { %p205_p12 = pnand %p212_p9, %p204_p11 }
  0x13   : > { %207 = dma.hbm_to_vmem [thread:$0]  (!%p205_p12), %s80_s20, 128, %s82_s22, [#allocation3]  }
  0x14   : > { %323 = dma.done.wait (%p212_p9), [#allocation3], 128  }
  0x15   : > { %325 = vsyncadd (%p212_p9), [#allocation3], 4294967168  ;;  %s107_s23 = sand.u32 1, %s336_s7   ;;  %s195_s24 = sshll.u32 %s378_s10, 3  ;;  %v110_v0 = vld [vmem:[#allocation2] sm:$0xff] }
  0x16   : > { %s193_s25 = sshll.u32 %s107_s23, 3  ;;  %s124_s28 = scalar_lea.hbm %s442_s1, %s195_s24  ;;  %v111_v1 = vadd.f32 1.0, %v110_v0 }
  0x17   : > { %s109_s29 = scalar_lea.vmem [#allocation5], %s193_s25  ;;  %s128_s2 = sshll.u32 %s124_s28, 4  ;;  %s129_s2 = int_to_ptr.hbm [resolvable:$true] %s128_s2 }
  0x18   : > { %s126_s30 = sshll.u32 %s109_s29, 4  ;;  %112 = vst [vmem:[%s109_s29] sm:$0xff] %v111_v1  ;;  %s114_s3 = scalar_lea.sflag [#allocation4], %s107_s23  ;;  %s127_s30 = int_to_ptr.vmem [resolvable:$true] %s126_s30 }
  0x19   : > { %s292_s4 = sshra.s32 %s129_s2, 4  ;;  %s298_s13 = scalar_lea.hbm %s442_s1, 16  ;;  %s293_s4 = int_to_ptr.hbm [resolvable:$true] %s292_s4 }
  0x1a   : > { %s294_s5 = scalar_lea.hbm %s293_s4, 8  ;;  %p299_p2 = scmp.lt.s32.totalorder %s293_s4, %s442_s1 }
  0x1b   : > { %p295_p13 = scmp.ne.s32.totalorder %s293_s4, %s294_s5  ;;  %p300_p3 = scmp.lt.s32.totalorder %s298_s13, %s294_s5 }
  0x1d   : > { %p296_p0 = pnand %p295_p13, %p395_p5  ;;  %p301_p4 = por %p300_p3, %p299_p2 }
  0x1f   : > { %p297_p1 = pneg %p296_p0 }
  0x21   : > { %p302_p7 = pnand %p301_p4, %p297_p1 }
  0x23   : > { %305 = shalt.err (!%p302_p7)
}
  0x24   : > { %202 = dma.vmem_to_hbm [thread:$0]  (%p395_p5), %s127_s30, 128, %s129_s2, %s114_s3  }
  0x25 PF: > { %p214_p8 = scmp.ge.s32.totalorder %s344_s9, 2  ;;  %s140_s19 = sand.u32 1, %s332_s6  }
  0x26   : > { %s141_s20 = scalar_lea.sflag [#allocation4], %s140_s19 }
  0x27   : > { %p209_p9 = pnand %p214_p8, %p399_p6 }
  0x29   : > { %p210_p10 = pneg %p209_p9 }
  0x2b   : > { %327 = dma.done.wait (%p210_p10), %s141_s20, 128  }
  0x2c   : > { %329 = vsyncadd (%p210_p10), %s141_s20, 4294967168  ;;  %p12_p11 = scmp.ge.s32.totalorder %s382_s12, 4   ;;  %s445_s6 = smov %s336_s7 }
  0x2d   : > { %s446_s7 = smov %s340_s8  ;;  %s447_s8 = smov %s393_s15 }
  0x2e   : > { %s448_s9 = smov %s382_s12  ;;  %14 = sbr.rel (!%p12_p11) target bundleno = 4 (0x4), region = 61 }
  0x33   :  { %147 = vsyncpa [#allocation3], 1 }
  0x34   :  { %149 = vsyncpa [#allocation3 + $0x1], 1 }
  0x35   :  { %150 = vsyncpa [#allocation4], 1 }
  0x36   :  { %152 = vsyncpa [#allocation4 + $0x1], 1 }

// kernel: tpu_custom_call.1
= control target key start
LH: loop header
LB: loop body
LE: loop exit
PB: predicated region body
PF: predicated region fallthrough
CT: control target
= control target key end

     0   :  { %s1767_s0 = inlined_call_operand.hbm [shape: f32[2,32,32], index: 0, kind: input, shape index: {}]   ;;  %s1768_s1 = inlined_call_operand.hbm [shape: f32[1,32], index: 1, kind: input, shape index: {}]   ;;  %s1769_s2 = inlined_call_operand.vmem [shape: f32[1,32], index: 2, kind: input, shape index: {}]   ;;  %s1770_s3 = inlined_call_operand.hbm [shape: bf16[32,96], index: 3, kind: input, shape index: {}]   ;;  %s1771_s4 = inlined_call_operand.vmem [shape: f32[1,96], index: 4, kind: input, shape index: {}]   ;;  %s1772_s5 = inlined_call_operand.hbm [shape: bf16[2,32,32], index: 5, kind: output, shape index: {0}]   ;;  %s1773_s6 = inlined_call_operand.hbm [shape: bf16[2,32,32], index: 6, kind: output, shape index: {1}]   ;;  %s1774_s7 = inlined_call_operand.hbm [shape: bf16[2,32,32], index: 7, kind: output, shape index: {2}]   ;;  %s1775_s8 = inlined_call_operand.hbm [shape: bf16[2,32,32], index: 8, kind: output, shape index: {3}]  }
   0x1   :  { %1786 = sst [smem:[#allocation22_spill]] %s1767_s0 }
   0x2   :  { %1787 = sst [smem:[#allocation23_spill]] %s1768_s1 }
   0x3   :  { %1788 = sst [smem:[#allocation24_spill]] %s1770_s3 }
   0x4   :  { %1789 = sst [smem:[#allocation25_spill]] %s1774_s7 }
   0x5   :  { %14 = vsyncpa [#allocation3], 0 }
   0x6   :  { %16 = vsyncpa [#allocation3 + $0x1], 0 }
   0x7   :  { %17 = vsyncpa [#allocation6], 0 }
   0x8   :  { %18 = vsyncpa [#allocation4], 0 }
   0x9   :  { %20 = vsyncpa [#allocation4 + $0x1], 0 }
   0xa   :  { %21 = vsyncpa [#allocation10], 0 }
   0xb   :  { %23 = vsyncpa [#allocation10 + $0x1], 0 }
   0xc   :  { %24 = vsyncpa [#allocation13], 0 }
   0xd   :  { %26 = vsyncpa [#allocation13 + $0x1], 0  ;;  %s1460_s27 = smov 0   ;;  %s1462_s28 = smov 0  }
   0xe   :  { %s1464_s29 = smov 0   ;;  %s1466_s30 = smov 0  }
   0xf   :  { %s1468_s9 = smov 0   ;;  %s1470_s10 = smov 0  }
  0x10 LB: > { %1790 = sst [smem:[#allocation19_spill]] %s1383_s27  ;;  %s1491_s11 = sadd.s32 4294967295, %s1403_s10   ;;  %s1403_s10 = sphi %s1470_s10, %s32_s10   ;;  %s1399_s9 = sphi %s1468_s9, %s1815_s9   ;;  %s1395_s30 = sphi %s1466_s30, %s1814_s30   ;;  %s1391_s29 = sphi %s1464_s29, %s1813_s29   ;;  %s1387_s28 = sphi %s1462_s28, %s1812_s28   ;;  %s1383_s27 = sphi %s1460_s27, %s1811_s27  }
  0x11   : > { %1791 = sst [smem:[#allocation20_spill]] %s1403_s10  ;;  %s1776_s12 = sadd.s32 4294967294, %s1403_s10  }
  0x12   : > { %p60_p0 = scmp.ne.s32.totalorder %s1391_s29, %s1387_s28  ;;  %p61_p1 = scmp.eq.s32.totalorder %s1403_s10, 0 }
  0x13   : > { %p66_p2 = scmp.ne.s32.totalorder %s1387_s28, %s1383_s27  ;;  %p67_p3 = scmp.eq.s32.totalorder %s1491_s11, 0 }
  0x14   : > { %p176_p4 = scmp.eq.s32.totalorder %s1491_s11, 1  ;;  %p1502_p5 = por %p61_p1, %p60_p0 }
  0x15   : > { %p182_p6 = scmp.eq.s32.totalorder %s1776_s12, 1  ;;  %p1510_p7 = por %p67_p3, %p66_p2 }
  0x16   : > { %p1514_p8 = por %p176_p4, %p60_p0  ;;  %p967_p10 = scmp.ge.s32.totalorder %s1403_s10, 1 }
  0x17   : > { %p1518_p9 = por %p182_p6, %p66_p2  ;;  %p273_p11 = scmp.lt.s32.totalorder %s1403_s10, 3 }
  0x18   : > { %s1797_s1 = sld [smem:[#allocation23_spill]]  ;;  %s1405_s22 = smov [#allocation5]  }
  0x19   : > { %s1795_s17 = scalar_select %p1518_p9, 1, 0 }
  0x1a   : > { %p1527_p12 = pnand %p967_p10, %p273_p11  ;;  %s287_s23 = sshll.u32 %s1405_s22, 4  ;;  %s288_s23 = int_to_ptr.vmem [resolvable:$true] %s287_s23 }
  0x1b   : > { %1796 = sst [smem:[#allocation21_spill]] %s1795_s17  ;;  %p970_p13 = scmp.ge.s32.totalorder %s1403_s10, 2 }
  0x1c   : > { %p1033_p0 = pneg %p1527_p12  ;;  %p1059_p1 = scmp.lt.s32.totalorder %s1403_s10, 2 }
  0x1d   : > { %s1799_s3 = sld [smem:[#allocation24_spill]]  ;;  %s1406_s19 = smov [#allocation7]  }
  0x1e   : > { %s285_s20 = sshll.u32 %s1797_s1, 4  ;;  %p1034_p2 = pnand %p1033_p0, %p67_p3  ;;  %s286_s20 = int_to_ptr.hbm [resolvable:$true] %s285_s20 }
  0x1f   : > { %p1542_p4 = pnand %p1059_p1, %p1502_p5  ;;  %s301_s22 = sshll.u32 %s1406_s19, 4  ;;  %s302_s22 = int_to_ptr.vmem [resolvable:$true] %s301_s22 }
  0x20   : > { %1036 = dma.hbm_to_vmem [thread:$0]  (!%p1034_p2), %s286_s20, 16, %s288_s23, [#allocation6]  }
  0x21   : > { %s1407_s12 = smov 64   ;;  %s1408_s13 = smov 4  }
  0x22   : > { %s318_s24 = sand.u32 1, %s1391_s29   ;;  %s44_s25 = sadd.s32 1, %s1399_s9 }
  0x23   : > { %s299_s26 = sshll.u32 %s1799_s3, 4  ;;  %s971_s1 = sshll.u32 %s318_s24, 5  ;;  %s300_s26 = int_to_ptr.hbm [resolvable:$true] %s299_s26 }
  0x24   : > { %1039 = dma.hbm_to_vmem [thread:$0]  (!%p1034_p2), %s300_s26, 256, %s302_s22, [#allocation6], %s1407_s12, %s1407_s12, %s1408_s13  }
  0x25   : > { %p46_p6 = scmp.ge.s32.totalorder %s44_s25, 2  ;;  %s1006_s14 = sshll.u32 %s1399_s9, 5 }
  0x26   : > { %s322_s3 = scalar_lea.vmem [#allocation2], %s971_s1  ;;  %s1801_s0 = sld [smem:[#allocation22_spill]] }
  0x27   : > { %s332_s10 = sshll.u32 %s322_s3, 4  ;;  %s1817_s25 = smov (%p46_p6, %s44_s25), 0  ;;  %s333_s10 = int_to_ptr.vmem [resolvable:$true] %s332_s10 }
  0x28   : > { %s48_s23 = ssub.s32 %s1399_s9, %s1817_s25  ;;  %s1802_s12 = sadd.s32 1, %s1391_s29 }
  0x29   : > { %p51_p5 = scmp.eq.s32.totalorder %s48_s23, 0  ;;  %s319_s26 = scalar_lea.sflag [#allocation3], %s318_s24 }
  0x2a   : > { %s1409_s22 = smov 128   ;;  %s1410_s7 = smov 8  }
  0x2b   : > { %s1559_s13 = scalar_select %p51_p5, %s1391_s29, %s1802_s12  }
  0x2c   : > { %s329_s20 = scalar_lea.hbm %s1801_s0, %s1006_s14  ;;  %344 = sbr.rel (%p1527_p12) target bundleno = 769 (0x301), region = 40 }
  0x2d   : > { %s330_s27 = sshll.u32 %s329_s20, 4  ;;  %s1566_s1 = sand.u32 (!%p1527_p12), 1, %s1387_s28   ;;  %s331_s27 = int_to_ptr.hbm [resolvable:$true] %s330_s27 }
  0x2e   : > { %1043 = dma.hbm_to_vmem [thread:$0]  (!%p1542_p4), %s331_s27, 512, %s333_s10, %s319_s26, %s1409_s22, %s1409_s22, %s1410_s7  }
  0x2f   : > { %s975_s3 = sshll.u32 (!%p1527_p12), %s1566_s1, 5  ;;  %s347_s17 = scalar_lea.sflag (!%p1527_p12), [#allocation3], %s1566_s1 }
  0x30   : > { %s350_s14 = scalar_lea.vmem (!%p1527_p12), [#allocation2], %s975_s3 }
  0x31   : > { %1362 = dma.done.wait (%p1510_p7), %s347_s17, 512  }
  0x32   : > { %1364 = vsyncadd (%p1510_p7), %s347_s17, 4294966784 }
  0x33   : > { %1366 = dma.done.wait (%p67_p3), [#allocation6], 272  }
  0x34   : > { %1368 = vsyncadd (%p67_p3), [#allocation6], 4294967024  ;;  %vm420_vm0 = vcmask 261120   ;;  %v416_v0 = vld [vmem:[%s350_s14 + $0x10] sm:$0xff]  ;;  %v414_v1 = vld [vmem:[%s350_s14] sm:$0xff]  ;;  %v1411_v8 = vmov 32.0  }
  0x35   : > { %v427_v2 = vsel %vm420_vm0, %v416_v0, 0.0  ;;  %v421_v3 = vsel %vm420_vm0, %v414_v1, 0.0  ;;  %v417_v4 = vld [vmem:[%s350_s14 + $0x18] sm:$0xff]  ;;  %v415_v5 = vld [vmem:[%s350_s14 + $0x8] sm:$0xff]  ;;  %1125 = vrcp.f32 %v1411_v8  ;;  %s1608_s10 = sshll.u32 %s1566_s1, 4  ;;  %vm534_vm12 = vcmask 257024  }
  0x36   : > { %428 = vadd.xlane.f32.xlu1 %v427_v2  ;;  %422 = vadd.xlane.f32.xlu0 %v421_v3  ;;  %v430_v6 = vsel %vm420_vm0, %v417_v4, 0.0  ;;  %v424_v7 = vsel %vm420_vm0, %v415_v5, 0.0  ;;  %v1008_v37 = vld [vmem:[#allocation7 + $0x8] sm:$0xff]  ;;  %v1007_v40 = vld [vmem:[#allocation7] sm:$0xff]  ;;  %s1612_s15 = scalar_lea.vmem [#allocation8], %s1608_s10  ;;  %s1629_s24 = scalar_lea.vmem [#allocation9], %s1608_s10 }
  0x37   : > { %581 = vmatpush.bf16.msra.mxu0 %v1008_v37  ;;  %1013 = vmatpush.bf16.msra.mxu1 %v1008_v37  ;;  %s1412_s19 = smov 96   ;;  %s1782_s20 = smov 64  }
  0x38   : > { %s1644_s23 = scalar_lea.vmem [#allocation12], %s1608_s10  ;;  %s715_s12 = sshll.u32 %s1629_s24, 4  ;;  %s716_s12 = int_to_ptr.vmem [resolvable:$true] %s715_s12 }
  0x39   : > { %s1656_s26 = sshll.u32 %s1395_s30, 4  ;;  %s671_s7 = sand.u32 1, %s1491_s11  }
  0x3a   : > { %s714_s14 = scalar_lea.hbm %s1773_s6, %s1656_s26  ;;  %s1664_s21 = scalar_lea.sflag [#allocation10], %s671_s7 }
  0x3b   : > { %v1126_v9 = vpop.eup %1125  ;;  %582 = vmatpush.bf16.msra.mxu0 %v1007_v40  ;;  %1014 = vmatpush.bf16.msra.mxu1 %v1007_v40  ;;  %s717_s27 = sshll.u32 %s714_s14, 4  ;;  %s1245_s22 = scalar_lea.hbm %s1773_s6, 32  ;;  %s718_s27 = int_to_ptr.hbm [resolvable:$true] %s717_s27 }
  0x3c   : > { %v434_v10 = vmul.f32 32.0, %v1126_v9  ;;  %vm438_vm1 = vweird.f32 %v1126_v9  ;;  %s1239_s18 = sshra.s32 %s718_s27, 4  ;;  %s1240_s18 = int_to_ptr.hbm [resolvable:$true] %s1239_s18 }
  0x3d   : > { %p1246_p11 = scmp.lt.s32.totalorder %s1240_s18, %s1773_s6 }
  0x3e   : > { %431 = vadd.xlane.f32.xlu1 %v430_v6  ;;  %425 = vadd.xlane.f32.xlu0 %v424_v7  ;;  %v435_v11 = vsub.f32 1.0, %v434_v10  ;;  %v1123_v7 = vld [vmem:[%s1769_s2] ss:$0 sm:$0xff] }
  0x40   : > { %v436_v12 = vmul.f32 %v1126_v9, %v435_v11 }
  0x42   : > { %v437_v13 = vadd.f32 %v1126_v9, %v436_v12 }
  0x44   : > { %v439_v14 = vsel %vm438_vm1, %v1126_v9, %v437_v13 }
  0xa9   : > { %v429_v15 = vpop.xlane.xlu1 %428  ;;  %v423_v16 = vpop.xlane.xlu0 %422 }
  0xaa   : > { %v442_v17 = vmul.f32 %v439_v14, %v429_v15  ;;  %v440_v18 = vmul.f32 %v439_v14, %v423_v16 }
  0xac   : > { %v1582_v19 = vsub.f32 %v416_v0, %v442_v17  ;;  %v1584_v20 = vsub.f32 %v414_v1, %v440_v18  ;;  %v1122_v1 = vld [vmem:[#allocation5] ss:$0 sm:$0xff] }
  0xae   : > { %v450_v21 = vmul.f32 %v1582_v19, %v1582_v19  ;;  %v448_v22 = vmul.f32 %v1584_v20, %v1584_v20 }
  0xb0   : > { %v458_v23 = vsel %vm420_vm0, %v450_v21, 0.0  ;;  %v452_v24 = vsel %vm420_vm0, %v448_v22, 0.0 }
  0xb1   : > { %v432_v25 = vpop.xlane.xlu1 %431  ;;  %459 = vadd.xlane.f32.xlu0 %v458_v23  ;;  %453 = vadd.xlane.f32.xlu2 %v452_v24  ;;  %v426_v26 = vpop.xlane.xlu0 %425 }
  0xb2   : > { %v443_v27 = vmul.f32 %v439_v14, %v432_v25  ;;  %v441_v28 = vmul.f32 %v439_v14, %v426_v26 }
  0xb4   : > { %v1592_v29 = vsub.f32 %v417_v4, %v443_v27  ;;  %v1594_v30 = vsub.f32 %v415_v5, %v441_v28 }
  0xb6   : > { %v451_v31 = vmul.f32 %v1592_v29, %v1592_v29  ;;  %v449_v32 = vmul.f32 %v1594_v30, %v1594_v30 }
  0xb8   : > { %v461_v33 = vsel %vm420_vm0, %v451_v31, 0.0  ;;  %v455_v34 = vsel %vm420_vm0, %v449_v32, 0.0 }
  0xb9   : > { %462 = vadd.xlane.f32.xlu1 %v461_v33  ;;  %456 = vadd.xlane.f32.xlu2 %v455_v34 }
 0x124   : > { %v454_v35 = vpop.xlane.xlu2 %453  ;;  %v460_v36 = vpop.xlane.xlu0 %459 }
 0x125   : > { %v464_v38 = vmul.f32 %v454_v35, %v439_v14  ;;  %v466_v39 = vmul.f32 %v460_v36, %v439_v14 }
 0x127   : > { %v468_v41 = vadd.f32 1e-05, %v464_v38  ;;  %v470_v42 = vadd.f32 1e-05, %v466_v39 }
 0x129   : > { %1127 = vrsqrt.f32 %v468_v41  ;;  %vm478_vm2 = vweird.f32 %v468_v41  ;;  %vm498_vm6 = vweird.f32 %v470_v42 }
 0x12a   : > { %1129 = vrsqrt.f32 %v470_v42 }
 0x12c   : > { %v463_v43 = vpop.xlane.xlu1 %462  ;;  %v457_v44 = vpop.xlane.xlu2 %456 }
 0x12d   : > { %v467_v45 = vmul.f32 %v463_v43, %v439_v14  ;;  %v465_v46 = vmul.f32 %v457_v44, %v439_v14 }
 0x12f   : > { %v1128_v47 = vpop.eup %1127  ;;  %v471_v48 = vadd.f32 1e-05, %v467_v45  ;;  %v469_v49 = vadd.f32 1e-05, %v465_v46 }
 0x130   : > { %v1130_v50 = vpop.eup %1129  ;;  %v473_v51 = vmul.f32 %v1128_v47, %v468_v41  ;;  %vm479_vm3 = vweird.f32 %v1128_v47 }
 0x131   : > { %v493_v52 = vmul.f32 %v1130_v50, %v470_v42  ;;  %1131 = vrsqrt.f32 %v471_v48  ;;  %vm499_vm4 = vweird.f32 %v1130_v50  ;;  %vm480_vm5 = vmor %vm478_vm2, %vm479_vm3  ;;  %vm488_vm9 = vweird.f32 %v469_v49 }
 0x132   : > { %v474_v53 = vmul.f32 %v1128_v47, %v473_v51  ;;  %1133 = vrsqrt.f32 %v469_v49  ;;  %vm500_vm7 = vmor %vm498_vm6, %vm499_vm4  ;;  %vm508_vm11 = vweird.f32 %v471_v48 }
 0x133   : > { %v494_v54 = vmul.f32 %v1130_v50, %v493_v52 }
 0x134   : > { %v475_v55 = vmul.f32 0.5, %v474_v53 }
 0x135   : > { %v495_v56 = vmul.f32 0.5, %v494_v54 }
 0x136   : > { %v476_v57 = vsub.f32 1.5, %v475_v55 }
 0x137   : > { %v1132_v58 = vpop.eup %1131  ;;  %v496_v59 = vsub.f32 1.5, %v495_v56 }
 0x138   : > { %v1134_v60 = vpop.eup %1133  ;;  %v477_v61 = vmul.f32 %v1128_v47, %v476_v57  ;;  %v503_v62 = vmul.f32 %v1132_v58, %v471_v48  ;;  %vm509_vm8 = vweird.f32 %v1132_v58 }
 0x139   : > { %v497_v63 = vmul.f32 %v1130_v50, %v496_v59  ;;  %v483_v0 = vmul.f32 %v1134_v60, %v469_v49  ;;  %vm489_vm10 = vweird.f32 %v1134_v60  ;;  %vm510_vm13 = vmor %vm508_vm11, %vm509_vm8 }
 0x13a   : > { %v481_v2 = vsel %vm480_vm5, %v1128_v47, %v477_v61  ;;  %v504_v3 = vmul.f32 %v1132_v58, %v503_v62  ;;  %vm490_vm14 = vmor %vm488_vm9, %vm489_vm10 }
 0x13b   : > { %v512_v4 = vmul.f32 %v481_v2, %v1584_v20  ;;  %v501_v5 = vsel %vm500_vm7, %v1130_v50, %v497_v63  ;;  %v484_v6 = vmul.f32 %v1134_v60, %v483_v0 }
 0x13c   : > { %v514_v8 = vmul.f32 %v501_v5, %v1582_v19  ;;  %v505_v9 = vmul.f32 0.5, %v504_v3 }
 0x13d   : > { %v485_v10 = vmul.f32 0.5, %v484_v6  ;;  %v519_v11 = vmul.f32 %v1122_v1, %v512_v4 }
 0x13e   : > { %v506_v12 = vsub.f32 1.5, %v505_v9  ;;  %v521_v13 = vmul.f32 %v1122_v1, %v514_v8 }
 0x13f   : > { %v486_v14 = vsub.f32 1.5, %v485_v10  ;;  %v526_v15 = vadd.f32 %v1123_v7, %v519_v11 }
 0x140   : > { %v507_v16 = vmul.f32 %v1132_v58, %v506_v12  ;;  %v528_v17 = vadd.f32 %v1123_v7, %v521_v13 }
 0x141   : > { %v487_v18 = vmul.f32 %v1134_v60, %v486_v14  ;;  %v530_v19 = vpack.c.bf16 %v526_v15, %v526_v15 }
 0x142   : > { %v511_v20 = vsel %vm510_vm13, %v1132_v58, %v507_v16  ;;  %v532_v21 = vpack.c.bf16 %v528_v17, %v528_v17 }
 0x143   : > { %v515_v22 = vmul.f32 %v511_v20, %v1592_v29  ;;  %v491_v23 = vsel %vm490_vm14, %v1134_v60, %v487_v18  ;;  %535 = vst.msk [vmem:[%s1612_s15] sm:$0xf] %vm534_vm12, %v530_v19  ;;  %v551_v34 = vunpack.c.l.b16 %v530_v19 }
 0x144   : > { %v513_v24 = vmul.f32 %v491_v23, %v1594_v30  ;;  %537 = vst.msk [vmem:[%s1612_s15 + $0x8] sm:$0xf] %vm534_vm12, %v532_v21  ;;  %v553_v29 = vunpack.c.l.b16 %v532_v21  ;;  %v1124_v30 = vld [vmem:[%s1771_s4] ss:$0 sm:$0xff] }
 0x145   : > { %v522_v25 = vmul.f32 %v1122_v1, %v515_v22 }
 0x146   : > { %v520_v26 = vmul.f32 %v1122_v1, %v513_v24 }
 0x147   : > { %v529_v27 = vadd.f32 %v1123_v7, %v522_v25 }
 0x148   : > { %v527_v28 = vadd.f32 %v1123_v7, %v520_v26 }
 0x149   : > { %v533_v31 = vpack.c.bf16 %v529_v27, %v529_v27 }
 0x14a   : > { %v531_v32 = vpack.c.bf16 %v527_v28, %v527_v28 }
 0x14b   : > { %v554_v33 = vunpack.c.l.b16 %v533_v31  ;;  %538 = vst.msk [vmem:[%s1612_s15 + $0xc] sm:$0xf] %vm534_vm12, %v533_v31 }
 0x14c   : > { %v552_v35 = vunpack.c.l.b16 %v531_v32  ;;  %536 = vst.msk [vmem:[%s1612_s15 + $0x4] sm:$0xf] %vm534_vm12, %v531_v32 }
 0x14d   : > { %v556_v36 = vpack.c.b16 %v554_v33, %v553_v29 }
 0x14e   : > { %v555_v37 = vpack.c.b16 %v552_v35, %v551_v34 }
 0x14f   : > { %991 = vmatmul.msk.bf16.vlgmr.msra.gmra.mxu1 %vm420_vm0, %v556_v36 }
 0x150   : > { %990 = vmatmul.msk.bf16.vlgmr.msra.gmra.mxu0 %vm420_vm0, %v555_v37 }
 0x1cc   : > { %v589_v38 = vpop.f32.mrf.mxu1 }
 0x1cd   : > { %v584_v39 = vpop.f32.mrf.mxu0  ;;  %v590_v40 = vadd.f32 %v1124_v30, %v589_v38 }
 0x1ce   : > { %v585_v41 = vadd.f32 %v1124_v30, %v584_v39 }
 0x1cf   : > { %v596_v42 = vpack.c.bf16 %v590_v40, %v590_v40 }
 0x1d0   : > { %v594_v43 = vpack.c.bf16 %v585_v41, %v585_v41 }
 0x1d1   : > { %600 = vst.msk [vmem:[%s1629_s24 + $0x8] sm:$0xf] %vm534_vm12, %v596_v42 }
 0x1d2   : > { %598 = vst.msk [vmem:[%s1629_s24] sm:$0xf] %vm534_vm12, %v594_v43 }
 0x1d4   : > { %v591_v44 = vpop.f32.mrf.mxu1 }
 0x1d5   : > { %v586_v45 = vpop.f32.mrf.mxu0  ;;  %v592_v46 = vadd.f32 %v1124_v30, %v591_v44 }
 0x1d6   : > { %v587_v47 = vadd.f32 %v1124_v30, %v586_v45 }
 0x1d7   : > { %v597_v48 = vpack.c.bf16 %v592_v46, %v592_v46  ;;  %v603_v49 = vpack.c.bf16 %v592_v46, %v590_v40 }
 0x1d8   : > { %v595_v50 = vpack.c.bf16 %v587_v47, %v587_v47  ;;  %v602_v51 = vpack.c.bf16 %v587_v47, %v585_v41 }
 0x1d9   : > { %601 = vst.msk [vmem:[%s1629_s24 + $0xc] sm:$0xf] %vm534_vm12, %v597_v48  ;;  %608 = vrot.lane.b32.xlu0 %v603_v49, %s1412_s19 }
 0x1da   : > { %599 = vst.msk [vmem:[%s1629_s24 + $0x4] sm:$0xf] %vm534_vm12, %v595_v50  ;;  %606 = vrot.lane.b32.xlu2 %v602_v51, %s1412_s19  ;;  %s1241_s19 = scalar_lea.hbm %s1240_s18, 16 }
 0x1db   : > { %p1242_p3 = scmp.ne.s32.totalorder %s1240_s18, %s1241_s19  ;;  %p1247_p12 = scmp.lt.s32.totalorder %s1245_s22, %s1241_s19 }
 0x1dd   : > { %p1243_p7 = pnand %p1242_p3, %p1514_p8  ;;  %p1248_p0 = por %p1247_p12, %p1246_p11 }
 0x1df   : > { %p1244_p10 = pneg %p1243_p7 }
 0x1e1   : > { %652 = vrot.lane.b32.xlu0 %v595_v50, %s1782_s20  ;;  %p1249_p1 = pnand %p1248_p0, %p1244_p10 }
 0x1e2   : > { %650 = vrot.lane.b32.xlu2 %v594_v43, %s1782_s20 }
 0x1e9   : > { %656 = vrot.lane.b32.xlu0 %v597_v48, %s1782_s20 }
 0x1ea   : > { %654 = vrot.lane.b32.xlu2 %v596_v42, %s1782_s20 }
 0x234   : > { %v607_v52 = vpop.permute.xlu2 %606 }
 0x235   : > { %612 = vxpose.xlu1.c.b16.start [1/2] (short) (narrow) %v607_v52, 32 }
 0x23c   : > { %v651_v53 = vpop.permute.xlu2 %650 }
 0x23d   : > { %662 = vst.msk [vmem:[%s1644_s23] sm:$0xf] %vm534_vm12, %v651_v53 }
 0x244   : > { %v655_v54 = vpop.permute.xlu2 %654 }
 0x245   : > { %664 = vst.msk [vmem:[%s1644_s23 + $0x8] sm:$0xf] %vm534_vm12, %v655_v54 }
 0x24b   : > { %v609_v55 = vpop.permute.xlu0 %608 }
 0x24c   : > { %613 = vxpose.xlu1.c.b16.end [2/2] (short) (narrow) %v609_v55, 32 }
 0x253   : > { %v653_v56 = vpop.permute.xlu0 %652 }
 0x254   : > { %663 = vst.msk [vmem:[%s1644_s23 + $0x4] sm:$0xf] %vm534_vm12, %v653_v56 }
 0x25b   : > { %v657_v57 = vpop.permute.xlu0 %656 }
 0x25c   : > { %665 = vst.msk [vmem:[%s1644_s23 + $0xc] sm:$0xf] %vm534_vm12, %v657_v57 }
 0x25d   : > { %1252 = shalt.err (!%p1249_p1)
}
 0x25e   : > { %s1784_s11 = smov 4   ;;  %s1803_s3 = smov 64  }
 0x25f   : > { %1026 = dma.vmem_to_hbm [thread:$0]  (%p1514_p8), %s716_s12, 256, %s718_s27, %s1664_s21, %s1803_s3, %s1803_s3, %s1784_s11  }
 0x260   : > { %s695_s0 = scalar_lea.hbm %s1772_s5, %s1656_s26  ;;  %s696_s20 = sshll.u32 %s1612_s15, 4  ;;  %s697_s20 = int_to_ptr.vmem [resolvable:$true] %s696_s20 }
 0x261   : > { %s698_s22 = sshll.u32 %s695_s0, 4  ;;  %s667_s7 = scalar_lea.sflag [#allocation4], %s1566_s1  ;;  %s699_s22 = int_to_ptr.hbm [resolvable:$true] %s698_s22 }
 0x262   : > { %s1267_s18 = sshra.s32 %s699_s22, 4  ;;  %s1273_s12 = scalar_lea.hbm %s1772_s5, 32  ;;  %s1268_s18 = int_to_ptr.hbm [resolvable:$true] %s1267_s18 }
 0x263   : > { %s1269_s19 = scalar_lea.hbm %s1268_s18, 16  ;;  %p1274_p5 = scmp.lt.s32.totalorder %s1268_s18, %s1772_s5 }
 0x264   : > { %p1270_p2 = scmp.ne.s32.totalorder %s1268_s18, %s1269_s19  ;;  %p1275_p3 = scmp.lt.s32.totalorder %s1273_s12, %s1269_s19 }
 0x266   : > { %p1271_p4 = pnand %p1270_p2, %p1514_p8  ;;  %p1276_p7 = por %p1275_p3, %p1274_p5 }
 0x268   : > { %p1272_p6 = pneg %p1271_p4 }
 0x26a   : > { %p1277_p10 = pnand %p1276_p7, %p1272_p6 }
 0x26c   : > { %1280 = shalt.err (!%p1277_p10)
}
 0x26d   : > { %s1804_s15 = smov 4   ;;  %s1805_s17 = sshll.u32 %s1644_s23, 4  ;;  %s753_s17 = int_to_ptr.vmem [resolvable:$true] %s1805_s17 }
 0x26e   : > { %1025 = dma.vmem_to_hbm [thread:$0]  (%p1514_p8), %s697_s20, 256, %s699_s22, %s667_s7, %s1803_s3, %s1803_s3, %s1804_s15  }
 0x26f   : > { %s751_s11 = scalar_lea.hbm %s1775_s8, %s1656_s26  ;;  %s682_s19 = scalar_lea.sflag [#allocation13], %s1566_s1 }
 0x270   : > { %s754_s18 = sshll.u32 %s751_s11, 4  ;;  %s1301_s20 = scalar_lea.hbm %s1775_s8, 32  ;;  %s755_s18 = int_to_ptr.hbm [resolvable:$true] %s754_s18 }
 0x271   : > { %s1295_s30 = sshra.s32 %s755_s18, 4  ;;  %s1296_s30 = int_to_ptr.hbm [resolvable:$true] %s1295_s30 }
 0x272   : > { %s1297_s24 = scalar_lea.hbm %s1296_s30, 16  ;;  %p1302_p1 = scmp.lt.s32.totalorder %s1296_s30, %s1775_s8 }
 0x273   : > { %p1298_p11 = scmp.ne.s32.totalorder %s1296_s30, %s1297_s24  ;;  %p1303_p2 = scmp.lt.s32.totalorder %s1301_s20, %s1297_s24 }
 0x275   : > { %p1299_p12 = pnand %p1298_p11, %p1514_p8  ;;  %p1304_p4 = por %p1303_p2, %p1302_p1 }
 0x277   : > { %p1300_p0 = pneg %p1299_p12 }
 0x279   : > { %p1305_p6 = pnand %p1304_p4, %p1300_p0 }
 0x27b   : > { %1308 = shalt.err (!%p1305_p6)
}
 0x27c   : > { %1028 = dma.vmem_to_hbm [thread:$0]  (%p1514_p8), %s753_s17, 256, %s755_s18, %s682_s19, %s1803_s3, %s1803_s3, %s1804_s15  }
 0x27d   : > { %s401_s1 = scalar_lea.vmem [#allocation11], %s1608_s10  ;;  %s1806_s0 = sld [smem:[#allocation25_spill]] }
 0x27e   : > { %s733_s30 = sshll.u32 %s401_s1, 4  ;;  %s734_s30 = int_to_ptr.vmem [resolvable:$true] %s733_s30 }
 0x283   : > { %s732_s11 = scalar_lea.hbm %s1806_s0, %s1656_s26  ;;  %s1329_s24 = scalar_lea.hbm %s1806_s0, 32 }
 0x284   : > { %s735_s17 = sshll.u32 %s732_s11, 4  ;;  %s736_s17 = int_to_ptr.hbm [resolvable:$true] %s735_s17 }
 0x285   : > { %s1323_s10 = sshra.s32 %s736_s17, 4  ;;  %s1324_s10 = int_to_ptr.hbm [resolvable:$true] %s1323_s10 }
 0x286   : > { %s1325_s18 = scalar_lea.hbm %s1324_s10, 16  ;;  %p1330_p10 = scmp.lt.s32.totalorder %s1324_s10, %s1806_s0 }
 0x287   : > { %p1326_p5 = scmp.ne.s32.totalorder %s1324_s10, %s1325_s18  ;;  %p1331_p11 = scmp.lt.s32.totalorder %s1329_s24, %s1325_s18 }
 0x289   : > { %p1327_p3 = pnand %p1326_p5, %p1514_p8  ;;  %p1332_p12 = por %p1331_p11, %p1330_p10 }
 0x28b   : > { %p1328_p7 = pneg %p1327_p3 }
 0x28d   : > { %p1333_p0 = pnand %p1332_p12, %p1328_p7 }
 0x2e8   : > { %v620_v58 = vpop.trf.xlu1 }
 0x2e9   : > { %v630_v59 = vunpack.c.l.b16 %v620_v58  ;;  %v631_v60 = vunpack.c.h.b16 %v620_v58 }
 0x2eb   : > { %v634_v61 = vpack.c.b16 %v630_v59, %v630_v59  ;;  %v635_v62 = vpack.c.b16 %v631_v60, %v631_v60 }
 0x2ed   : > { %642 = vst.msk [vmem:[%s401_s1] sm:$0xf] %vm534_vm12, %v634_v61 }
 0x2ee   : > { %643 = vst.msk [vmem:[%s401_s1 + $0x4] sm:$0xf] %vm534_vm12, %v635_v62 }
 0x2f8   : > { %v621_v63 = vpop.trf.xlu1 }
 0x2f9   : > { %v632_v0 = vunpack.c.l.b16 %v621_v63  ;;  %v633_v1 = vunpack.c.h.b16 %v621_v63 }
 0x2fb   : > { %v636_v2 = vpack.c.b16 %v632_v0, %v632_v0  ;;  %v637_v3 = vpack.c.b16 %v633_v1, %v633_v1 }
 0x2fd   : > { %644 = vst.msk [vmem:[%s401_s1 + $0x8] sm:$0xf] %vm534_vm12, %v636_v2 }
 0x2fe   : > { %645 = vst.msk [vmem:[%s401_s1 + $0xc] sm:$0xf] %vm534_vm12, %v637_v3 }
 0x2ff   : > { %1336 = shalt.err (!%p1333_p0)
}
 0x300   : > { %1027 = dma.vmem_to_hbm [thread:$0]  (%p1514_p8), %s734_s30, 256, %s736_s17, %s1664_s21, %s1803_s3, %s1803_s3, %s1804_s15  }
 0x301 PF: > { %s1807_s20 = sld [smem:[#allocation19_spill]]  ;;  %p1045_p1 = pnand %p970_p13, %p1518_p9 }
 0x302   : > { %s1809_s22 = sld [smem:[#allocation20_spill]] }
 0x303   : > { %p1046_p2 = pneg %p1045_p1 }
 0x307   : > { %s769_s1 = sand.u32 1, %s1807_s20  }
 0x308   : > { %s770_s7 = scalar_lea.sflag [#allocation4], %s769_s1 }
 0x309   : > { %1370 = dma.done.wait (%p1046_p2), %s770_s7, 256  }
 0x30a   : > { %1372 = vsyncadd (%p1046_p2), %s770_s7, 4294967040  ;;  %s1810_s14 = sadd.s32 4294967294, %s1809_s22  }
 0x30b   : > { %s779_s16 = sand.u32 1, %s1810_s14  }
 0x30c   : > { %s780_s11 = scalar_lea.sflag [#allocation10], %s779_s16 }
 0x30d   : > { %1374 = dma.done.wait (%p1046_p2), %s780_s11, 512  }
 0x30e   : > { %1376 = vsyncadd (%p1046_p2), %s780_s11, 4294966784  ;;  %s800_s10 = scalar_lea.sflag [#allocation13], %s769_s1 }
 0x30f   : > { %1378 = dma.done.wait (%p1046_p2), %s800_s10, 256  }
 0x310   : > { %1380 = vsyncadd (%p1046_p2), %s800_s10, 4294967040  ;;  %s32_s10 = sadd.s32 1, %s1809_s22   ;;  %s1811_s27 = smov %s1387_s28 }
 0x311   : > { %p29_p8 = scmp.ge.s32.totalorder %s32_s10, 4   ;;  %s1812_s28 = smov %s1391_s29 }
 0x312   : > { %s1813_s29 = smov %s1559_s13  ;;  %s1814_s30 = smov %s1399_s9 }
 0x313   : > { %s1815_s9 = smov %s1817_s25  ;;  %31 = sbr.rel (!%p29_p8) target bundleno = 16 (0x10), region = 142 }
 0x318   :  { %806 = vsyncpa [#allocation3], 1 }
 0x319   :  { %808 = vsyncpa [#allocation3 + $0x1], 1 }
 0x31a   :  { %809 = vsyncpa [#allocation6], 1 }
 0x31b   :  { %810 = vsyncpa [#allocation4], 1 }
 0x31c   :  { %812 = vsyncpa [#allocation4 + $0x1], 1 }
 0x31d   :  { %813 = vsyncpa [#allocation10], 1 }
 0x31e   :  { %815 = vsyncpa [#allocation10 + $0x1], 1 }
 0x31f   :  { %816 = vsyncpa [#allocation13], 1 }
 0x320   :  { %818 = vsyncpa [#allocation13 + $0x1], 1 }

</bundles_post_ra>
